<compile_context>
chip_gen: v6e
topology: v6e:2x2x1
jax: 0.10.0
libtpu: 0.0.40
codegen_flags: <defaults>
</compile_context>

<pallas_src>
import functools

import jax
import jax.numpy as jnp
from jax import lax
from jax.experimental import pallas as pl
from jax.experimental.pallas import tpu as pltpu


# -----------------------------------------------------------------------------------
# Pass 1: fused im2col 3x3 conv (stride 1, replicate padding already applied) + partial
# BatchNorm statistics.  Layout: NCHW with padded spatial flattened on lanes.
# -----------------------------------------------------------------------------------
def _conv_im2col_kernel(x_ref, w_ref, mask_ref, conv_ref, stats_ref, patch_ref,
                        *, Cin, Cout, H, W, Wpad):
    L = H * Wpad
    xs = x_ref[...].astype(jnp.float32)            # (Cin, FLP) bf16 -> f32, cast once

    # Build the im2col operand once in VMEM scratch: tap t = (kh*3 + kw) occupies rows
    # [t*Cin, (t+1)*Cin); each tap is a contiguous lane slice of the flattened input.
    for kh in range(3):
        for kw in range(3):
            t = kh * 3 + kw
            s = kh * Wpad + kw
            patch_ref[t * Cin:(t + 1) * Cin, :] = xs[:, s:s + L]

    # Single MXU matmul: (Cout, 9*Cin) @ (9*Cin, H*Wpad) -> (Cout, H*Wpad), f32 acc.
    acc = jnp.dot(w_ref[...], patch_ref[...], preferred_element_type=jnp.float32)
    conv_ref[...] = acc                            # lane-dense store (last dim = H*Wpad)

    # Per-channel partial BN statistics; junk pad columns are masked out.
    m = mask_ref[...]                              # (1, L): 1.0 valid / 0.0 pad column
    am = acc * m
    stats_ref[0, :] = jnp.sum(am, axis=1)          # sum
    stats_ref[1, :] = jnp.sum(am * acc, axis=1)    # sum of squares


# -----------------------------------------------------------------------------------
# Pass 2: y -> max(y * scale + shift, 0), per-row (i.e. per-channel) scale/shift,
# stripping the junk pad columns (slice is a no-op when the input is already compact).
# -----------------------------------------------------------------------------------
def _bn_relu_kernel(y_ref, scale_ref, shift_ref, out_ref, *, W):
    y = y_ref[...][:, :W]
    out_ref[...] = jnp.maximum(y * scale_ref[...] + shift_ref[...], 0.0)


def _pick_row_tile(total, cap=512):
    if total <= cap:
        return total
    for cand in range(cap, 0, -1):
        if total % cand == 0 and cand % 8 == 0:
            return cand
    return total


def conv_layer_forward(x_nchw, weight_oihw, gamma, beta, *, padding=1, stride=1,
                       max_pooling=False, dropout=0.0, eps=1e-5):
    """Pallas equivalent of convLayer.forward (training-mode BatchNorm stats)."""
    assert stride == 1 and padding == 1, "only the module defaults are implemented"
    # TODO(synk): dropout > 0 not implemented (module default is dropout=0).
    N, Cin, H, W = x_nchw.shape
    Cout = weight_oihw.shape[0]
    Wpad = W + 2
    FL = (H + 2) * Wpad
    L = H * Wpad
    FLP = ((FL + 2 + 127) // 128) * 128            # room for the (kh=2, kw=2) overhang

    # Replicate pad, flatten padded spatial onto lanes, cast to bf16 (halves input DMA).
    # TODO(synk): fold replicate padding / flattening into the kernel DMA (clamped
    # index_map) to remove this wrapper HBM pass entirely.
    xpad = jnp.pad(x_nchw, ((0, 0), (0, 0), (1, 1), (1, 1)), mode="edge")
    xflat = jnp.pad(xpad.reshape(N, Cin, FL), ((0, 0), (0, 0), (0, FLP - FL)))
    xflat = xflat.astype(jnp.bfloat16)

    # (Cout, Cin, 3, 3) -> (Cout, 9*Cin); column order (kh, kw, cin) matches the im2col
    # row order built inside the kernel.
    w2d = jnp.transpose(weight_oihw, (0, 2, 3, 1)).reshape(Cout, 9 * Cin)
    w2d = w2d.astype(jnp.float32)

    colmask = ((jnp.arange(L) % Wpad) < W).astype(jnp.float32).reshape(1, L)

    kernel1 = functools.partial(_conv_im2col_kernel, Cin=Cin, Cout=Cout,
                                H=H, W=W, Wpad=Wpad)
    conv_flat, stats = pl.pallas_call(
        kernel1,
        grid=(N,),
        in_specs=[
            pl.BlockSpec((None, Cin, FLP), lambda n: (n, 0, 0)),
            pl.BlockSpec((Cout, 9 * Cin), lambda n: (0, 0)),
            pl.BlockSpec((1, L), lambda n: (0, 0)),
        ],
        out_specs=(
            pl.BlockSpec((None, Cout, L), lambda n: (n, 0, 0)),
            pl.BlockSpec((None, 2, Cout), lambda n: (n, 0, 0)),
        ),
        out_shape=(
            jax.ShapeDtypeStruct((N, Cout, L), jnp.float32),
            jax.ShapeDtypeStruct((N, 2, Cout), jnp.float32),
        ),
        scratch_shapes=[pltpu.VMEM((9 * Cin, L), jnp.float32)],
        compiler_params=pltpu.CompilerParams(
            dimension_semantics=("parallel",),
            vmem_limit_bytes=32 * 1024 * 1024),
    )(xflat, w2d, colmask)

    if max_pooling:
        assert H % 2 == 0 and W % 2 == 0
        # Pool in XLA between the two Pallas passes (module order: conv -> pool -> BN).
        conv4 = conv_flat.reshape(N, Cout, H, Wpad)[..., :W]
        y = conv4.reshape(N, Cout, H // 2, 2, W // 2, 2).max(axis=(3, 5))
        Hr, Wr = H // 2, W // 2
        mean = jnp.mean(y, axis=(0, 2, 3))
        var = jnp.mean((y - mean[None, :, None, None]) ** 2, axis=(0, 2, 3))
        y2 = y.reshape(N, Cout * Hr, Wr)
        Win = Wr
    else:
        Hr, Wr = H, W
        cnt = jnp.float32(N * H * W)
        ssum = jnp.sum(stats[:, 0, :], axis=0)
        ssq = jnp.sum(stats[:, 1, :], axis=0)
        mean = ssum / cnt
        var = jnp.maximum(ssq / cnt - mean * mean, 0.0)   # biased (training-mode) var
        y2 = conv_flat.reshape(N, Cout * H, Wpad)         # free reshape, pad cols kept
        Win = Wpad

    # Fold BN into a per-channel scale/shift, expanded to per-row for the 2-D row view.
    scale = gamma.astype(jnp.float32) * lax.rsqrt(var + eps)
    shift = beta.astype(jnp.float32) - mean * scale
    row_scale = jnp.repeat(scale, Hr).reshape(Cout * Hr, 1)
    row_shift = jnp.repeat(shift, Hr).reshape(Cout * Hr, 1)

    R = Cout * Hr
    TRR = _pick_row_tile(R)
    kernel2 = functools.partial(_bn_relu_kernel, W=Wr)
    out2 = pl.pallas_call(
        kernel2,
        grid=(N, R // TRR),
        in_specs=[
            pl.BlockSpec((None, TRR, Win), lambda n, r: (n, r, 0)),
            pl.BlockSpec((TRR, 1), lambda n, r: (r, 0)),
            pl.BlockSpec((TRR, 1), lambda n, r: (r, 0)),
        ],
        out_specs=pl.BlockSpec((None, TRR, Wr), lambda n, r: (n, r, 0)),
        out_shape=jax.ShapeDtypeStruct((N, R, Wr), jnp.float32),
        compiler_params=pltpu.CompilerParams(
            dimension_semantics=("parallel", "parallel"),
            vmem_limit_bytes=32 * 1024 * 1024),
    )(y2, row_scale, row_shift)

    return out2.reshape(N, Cout, Hr, Wr)                  # NCHW, no transpose needed


def _reference_forward(x_nchw, weight_oihw, gamma, beta, *, max_pooling=False, eps=1e-5):
    """Pure-JAX reference (conv -> optional pool -> BN(train stats) -> ReLU)."""
    xpad = jnp.pad(x_nchw, ((0, 0), (0, 0), (1, 1), (1, 1)), mode="edge")
    xpad = xpad.astype(jnp.bfloat16).astype(jnp.float32)  # match kernel input rounding
    y = lax.conv_general_dilated(xpad, weight_oihw, (1, 1), "VALID",
                                 dimension_numbers=("NCHW", "OIHW", "NCHW"))
    if max_pooling:
        n, c, h, w = y.shape
        y = y.reshape(n, c, h // 2, 2, w // 2, 2).max(axis=(3, 5))
    mean = jnp.mean(y, axis=(0, 2, 3), keepdims=True)
    var = jnp.mean((y - mean) ** 2, axis=(0, 2, 3), keepdims=True)
    y = (y - mean) * lax.rsqrt(var + eps)
    y = y * gamma[None, :, None, None] + beta[None, :, None, None]
    return jnp.maximum(y, 0.0)


if __name__ == "__main__":
    key = jax.random.PRNGKey(0)
    kx, kw, kg, kb = jax.random.split(key, 4)

    N, Cin, H, W = 2, 4, 16, 16
    Cout = 8

    x = jax.random.normal(kx, (N, Cin, H, W), jnp.float32)
    weight = 0.1 * jax.random.normal(kw, (Cout, Cin, 3, 3), jnp.float32)  # Conv2d, bias=False
    gamma = 1.0 + 0.1 * jax.random.normal(kg, (Cout,), jnp.float32)
    beta = 0.05 * jax.random.normal(kb, (Cout,), jnp.float32)

    # Default config: conv -> BN -> ReLU
    out = jax.block_until_ready(conv_layer_forward(x, weight, gamma, beta))
    ref = jax.block_until_ready(_reference_forward(x, weight, gamma, beta))
    assert out.shape == (N, Cout, H, W)
    assert jnp.allclose(out, ref, atol=2e-3, rtol=2e-3), \
        float(jnp.max(jnp.abs(out - ref)))

    # max_pooling=True config: conv -> pool -> BN -> ReLU
    out_p = jax.block_until_ready(
        conv_layer_forward(x, weight, gamma, beta, max_pooling=True))
    ref_p = jax.block_until_ready(
        _reference_forward(x, weight, gamma, beta, max_pooling=True))
    assert out_p.shape == (N, Cout, H // 2, W // 2)
    assert jnp.allclose(out_p, ref_p, atol=2e-3, rtol=2e-3), \
        float(jnp.max(jnp.abs(out_p - ref_p)))

    print("KERNEL_OK")
</pallas_src>

<mosaic_0001>
module attributes {stable_mosaic.version = 11 : i64} {
  func.func @_conv_im2col_kernel(%arg0: i32, %arg1: memref<1x4x384xbf16, #tpu.memory_space<vmem>>, %arg2: memref<8x36xf32, #tpu.memory_space<vmem>>, %arg3: memref<1x288xf32, #tpu.memory_space<vmem>>, %arg4: memref<1x8x288xf32, #tpu.memory_space<vmem>>, %arg5: memref<1x2x8xf32, #tpu.memory_space<vmem>>, %arg6: memref<36x288xf32, #tpu.memory_space<vmem>>) attributes {dimension_semantics = [#tpu.dimension_semantics<parallel>], iteration_bounds = array<i64: 2>, scalar_prefetch = 0 : i64, scratch_operands = 1 : i64, tpu.core_type = #tpu.core_type<tc>, window_params = [{transform_indices = @transform_0, window_bounds = array<i64: 1, 4, 384>}, {pipeline_mode = #tpu.pipeline_mode<synchronous>, transform_indices = @transform_1, window_bounds = array<i64: 8, 36>}, {pipeline_mode = #tpu.pipeline_mode<synchronous>, transform_indices = @transform_2, window_bounds = array<i64: 1, 288>}, {transform_indices = @transform_3, window_bounds = array<i64: 1, 8, 288>}, {transform_indices = @transform_4, window_bounds = array<i64: 1, 2, 8>}]} {
    %c0 = arith.constant 0 : index
    %c0_0 = arith.constant 0 : index
    %c0_1 = arith.constant 0 : index
    %0 = vector.load %arg1[%c0, %c0_0, %c0_1] : memref<1x4x384xbf16, #tpu.memory_space<vmem>>, vector<1x4x384xbf16>
    %1 = vector.shape_cast %0 : vector<1x4x384xbf16> to vector<4x384xbf16>
    %2 = arith.extf %1 : vector<4x384xbf16> to vector<4x384xf32>
    %3 = vector.extract_strided_slice %2 {offsets = [0, 0], sizes = [4, 288], strides = [1, 1]} : vector<4x384xf32> to vector<4x288xf32>
    %c0_2 = arith.constant 0 : index
    %c0_3 = arith.constant 0 : index
    %4 = vector.load %arg6[%c0_2, %c0_3] : memref<36x288xf32, #tpu.memory_space<vmem>>, vector<4x288xf32>
    tpu.vector_store %arg6[%c0_2, %c0_3], %3 {strides = array<i32>} : memref<36x288xf32, #tpu.memory_space<vmem>>, vector<4x288xf32>,
    %5 = vector.extract_strided_slice %2 {offsets = [0, 1], sizes = [4, 288], strides = [1, 1]} : vector<4x384xf32> to vector<4x288xf32>
    %c4 = arith.constant 4 : index
    %c0_4 = arith.constant 0 : index
    %6 = vector.load %arg6[%c4, %c0_4] : memref<36x288xf32, #tpu.memory_space<vmem>>, vector<4x288xf32>
    tpu.vector_store %arg6[%c4, %c0_4], %5 {strides = array<i32>} : memref<36x288xf32, #tpu.memory_space<vmem>>, vector<4x288xf32>,
    %7 = vector.extract_strided_slice %2 {offsets = [0, 2], sizes = [4, 288], strides = [1, 1]} : vector<4x384xf32> to vector<4x288xf32>
    %c8 = arith.constant 8 : index
    %c0_5 = arith.constant 0 : index
    %8 = vector.load %arg6[%c8, %c0_5] : memref<36x288xf32, #tpu.memory_space<vmem>>, vector<4x288xf32>
    tpu.vector_store %arg6[%c8, %c0_5], %7 {strides = array<i32>} : memref<36x288xf32, #tpu.memory_space<vmem>>, vector<4x288xf32>,
    %9 = vector.extract_strided_slice %2 {offsets = [0, 18], sizes = [4, 288], strides = [1, 1]} : vector<4x384xf32> to vector<4x288xf32>
    %c12 = arith.constant 12 : index
    %c0_6 = arith.constant 0 : index
    %10 = vector.load %arg6[%c12, %c0_6] : memref<36x288xf32, #tpu.memory_space<vmem>>, vector<4x288xf32>
    tpu.vector_store %arg6[%c12, %c0_6], %9 {strides = array<i32>} : memref<36x288xf32, #tpu.memory_space<vmem>>, vector<4x288xf32>,
    %11 = vector.extract_strided_slice %2 {offsets = [0, 19], sizes = [4, 288], strides = [1, 1]} : vector<4x384xf32> to vector<4x288xf32>
    %c16 = arith.constant 16 : index
    %c0_7 = arith.constant 0 : index
    %12 = vector.load %arg6[%c16, %c0_7] : memref<36x288xf32, #tpu.memory_space<vmem>>, vector<4x288xf32>
    tpu.vector_store %arg6[%c16, %c0_7], %11 {strides = array<i32>} : memref<36x288xf32, #tpu.memory_space<vmem>>, vector<4x288xf32>,
    %13 = vector.extract_strided_slice %2 {offsets = [0, 20], sizes = [4, 288], strides = [1, 1]} : vector<4x384xf32> to vector<4x288xf32>
    %c20 = arith.constant 20 : index
    %c0_8 = arith.constant 0 : index
    %14 = vector.load %arg6[%c20, %c0_8] : memref<36x288xf32, #tpu.memory_space<vmem>>, vector<4x288xf32>
    tpu.vector_store %arg6[%c20, %c0_8], %13 {strides = array<i32>} : memref<36x288xf32, #tpu.memory_space<vmem>>, vector<4x288xf32>,
    %15 = vector.extract_strided_slice %2 {offsets = [0, 36], sizes = [4, 288], strides = [1, 1]} : vector<4x384xf32> to vector<4x288xf32>
    %c24 = arith.constant 24 : index
    %c0_9 = arith.constant 0 : index
    %16 = vector.load %arg6[%c24, %c0_9] : memref<36x288xf32, #tpu.memory_space<vmem>>, vector<4x288xf32>
    tpu.vector_store %arg6[%c24, %c0_9], %15 {strides = array<i32>} : memref<36x288xf32, #tpu.memory_space<vmem>>, vector<4x288xf32>,
    %17 = vector.extract_strided_slice %2 {offsets = [0, 37], sizes = [4, 288], strides = [1, 1]} : vector<4x384xf32> to vector<4x288xf32>
    %c28 = arith.constant 28 : index
    %c0_10 = arith.constant 0 : index
    %18 = vector.load %arg6[%c28, %c0_10] : memref<36x288xf32, #tpu.memory_space<vmem>>, vector<4x288xf32>
    tpu.vector_store %arg6[%c28, %c0_10], %17 {strides = array<i32>} : memref<36x288xf32, #tpu.memory_space<vmem>>, vector<4x288xf32>,
    %19 = vector.extract_strided_slice %2 {offsets = [0, 38], sizes = [4, 288], strides = [1, 1]} : vector<4x384xf32> to vector<4x288xf32>
    %c32 = arith.constant 32 : index
    %c0_11 = arith.constant 0 : index
    %20 = vector.load %arg6[%c32, %c0_11] : memref<36x288xf32, #tpu.memory_space<vmem>>, vector<4x288xf32>
    tpu.vector_store %arg6[%c32, %c0_11], %19 {strides = array<i32>} : memref<36x288xf32, #tpu.memory_space<vmem>>, vector<4x288xf32>,
    %c0_12 = arith.constant 0 : index
    %c0_13 = arith.constant 0 : index
    %21 = vector.load %arg2[%c0_12, %c0_13] : memref<8x36xf32, #tpu.memory_space<vmem>>, vector<8x36xf32>
    %c0_14 = arith.constant 0 : index
    %c0_15 = arith.constant 0 : index
    %22 = vector.load %arg6[%c0_14, %c0_15] : memref<36x288xf32, #tpu.memory_space<vmem>>, vector<36x288xf32>
    %cst = arith.constant dense<0.000000e+00> : vector<8x288xf32>
    %23 = tpu.matmul %21, %22, %cst {dimension_numbers = #tpu.dot_dimension_numbers<[1], [0], [0], [1], [0, 0, 1, 1], [], []>} : vector<8x36xf32>, vector<36x288xf32>, vector<8x288xf32> -> vector<8x288xf32>
    %c0_16 = arith.constant 0 : index
    %c0_17 = arith.constant 0 : index
    %c0_18 = arith.constant 0 : index
    %24 = vector.load %arg4[%c0_16, %c0_17, %c0_18] : memref<1x8x288xf32, #tpu.memory_space<vmem>>, vector<1x8x288xf32>
    %25 = vector.shape_cast %24 : vector<1x8x288xf32> to vector<8x288xf32>
    %26 = vector.shape_cast %23 : vector<8x288xf32> to vector<1x8x288xf32>
    tpu.vector_store %arg4[%c0_16, %c0_17, %c0_18], %26 {strides = array<i32>} : memref<1x8x288xf32, #tpu.memory_space<vmem>>, vector<1x8x288xf32>,
    %c0_19 = arith.constant 0 : index
    %c0_20 = arith.constant 0 : index
    %27 = vector.load %arg3[%c0_19, %c0_20] : memref<1x288xf32, #tpu.memory_space<vmem>>, vector<1x288xf32>
    %28 = vector.broadcast %27 : vector<1x288xf32> to vector<8x288xf32>
    %29 = arith.mulf %23, %28 : vector<8x288xf32>
    %cst_21 = arith.constant dense<0.000000e+00> : vector<8xf32>
    %30 = vector.multi_reduction <add>, %29, %cst_21 [1] : vector<8x288xf32> to vector<8xf32>
    %c0_22 = arith.constant 0 : index
    %c0_23 = arith.constant 0 : index
    %c0_24 = arith.constant 0 : index
    %31 = vector.load %arg5[%c0_22, %c0_23, %c0_24] : memref<1x2x8xf32, #tpu.memory_space<vmem>>, vector<1x1x8xf32>
    %32 = vector.shape_cast %31 : vector<1x1x8xf32> to vector<8xf32>
    %33 = vector.shape_cast %30 : vector<8xf32> to vector<1x1x8xf32>
    tpu.vector_store %arg5[%c0_22, %c0_23, %c0_24], %33 {strides = array<i32>} : memref<1x2x8xf32, #tpu.memory_space<vmem>>, vector<1x1x8xf32>,
    %34 = arith.mulf %29, %23 : vector<8x288xf32>
    %cst_25 = arith.constant dense<0.000000e+00> : vector<8xf32>
    %35 = vector.multi_reduction <add>, %34, %cst_25 [1] : vector<8x288xf32> to vector<8xf32>
    %c0_26 = arith.constant 0 : index
    %c1 = arith.constant 1 : index
    %c0_27 = arith.constant 0 : index
    %36 = vector.load %arg5[%c0_26, %c1, %c0_27] : memref<1x2x8xf32, #tpu.memory_space<vmem>>, vector<1x1x8xf32>
    %37 = vector.shape_cast %36 : vector<1x1x8xf32> to vector<8xf32>
    %38 = vector.shape_cast %35 : vector<8xf32> to vector<1x1x8xf32>
    tpu.vector_store %arg5[%c0_26, %c1, %c0_27], %38 {strides = array<i32>} : memref<1x2x8xf32, #tpu.memory_space<vmem>>, vector<1x1x8xf32>,
    return
  }
  func.func @transform_0(%arg0: i32) -> (i32, i32, i32) {
    %c0_i32 = arith.constant 0 : i32
    %c0_i32_0 = arith.constant 0 : i32
    %c0_i32_1 = arith.constant 0 : i32
    return %arg0, %c0_i32, %c0_i32_0 : i32, i32, i32
  }
  func.func @transform_1(%arg0: i32) -> (i32, i32) {
    %c0_i32 = arith.constant 0 : i32
    %c0_i32_0 = arith.constant 0 : i32
    %c0_i32_1 = arith.constant 0 : i32
    return %c0_i32, %c0_i32_0 : i32, i32
  }
  func.func @transform_2(%arg0: i32) -> (i32, i32) {
    %c0_i32 = arith.constant 0 : i32
    %c0_i32_0 = arith.constant 0 : i32
    %c0_i32_1 = arith.constant 0 : i32
    return %c0_i32, %c0_i32_0 : i32, i32
  }
  func.func @transform_3(%arg0: i32) -> (i32, i32, i32) {
    %c0_i32 = arith.constant 0 : i32
    %c0_i32_0 = arith.constant 0 : i32
    %c0_i32_1 = arith.constant 0 : i32
    return %arg0, %c0_i32, %c0_i32_0 : i32, i32, i32
  }
  func.func @transform_4(%arg0: i32) -> (i32, i32, i32) {
    %c0_i32 = arith.constant 0 : i32
    %c0_i32_0 = arith.constant 0 : i32
    %c0_i32_1 = arith.constant 0 : i32
    return %arg0, %c0_i32, %c0_i32_0 : i32, i32, i32
  }
}

</mosaic_0001>

<bundles_post_ra>
// kernel: tpu_custom_call.1
= control target key start
LH: loop header
LB: loop body
LE: loop exit
PB: predicated region body
PF: predicated region fallthrough
CT: control target
= control target key end

     0   :  { %10 = vsyncpa [#allocation4], 0  ;;  %s1311_s0 = inlined_call_operand.hbm [shape: bf16[2,4,384], index: 0, kind: input, shape index: {}]   ;;  %s1312_s1 = inlined_call_operand.hbm [shape: f32[8,36], index: 1, kind: input, shape index: {}]   ;;  %s1313_s2 = inlined_call_operand.vmem [shape: f32[1,288], index: 2, kind: input, shape index: {}]   ;;  %s1314_s3 = inlined_call_operand.hbm [shape: f32[2,8,288], index: 3, kind: output, shape index: {0}]   ;;  %s1315_s4 = inlined_call_operand.hbm [shape: f32[2,2,8], index: 4, kind: output, shape index: {1}]  }
   0x1   :  { %12 = vsyncpa [#allocation4 + $0x1], 0 }
   0x2   :  { %13 = vsyncpa [#allocation7], 0 }
   0x3   :  { %14 = vsyncpa [#allocation5], 0 }
   0x4   :  { %16 = vsyncpa [#allocation5 + $0x1], 0 }
   0x5   :  { %17 = vsyncpa [#allocation10], 0 }
   0x6   :  { %19 = vsyncpa [#allocation10 + $0x1], 0  ;;  %s1089_s15 = smov 0   ;;  %s1091_s16 = smov 0  }
   0x7   :  { %s1093_s17 = smov 0   ;;  %s1095_s18 = smov 0  }
   0x8 LB: > { %s1110_s19 = sadd.s32 4294967295, %s1048_s18   ;;  %s742_s20 = sadd.s32 4294967294, %s1048_s18   ;;  %s1048_s18 = sphi %s1095_s18, %s1338_s18   ;;  %s1044_s17 = sphi %s1093_s17, %s1337_s17   ;;  %s1040_s16 = sphi %s1091_s16, %s1336_s16   ;;  %s1036_s15 = sphi %s1089_s15, %s1335_s15  }
   0x9   : > { %p45_p0 = scmp.ne.s32.totalorder %s1040_s16, %s1036_s15  ;;  %p1316_p1 = scmp.eq.s32.totalorder %s1110_s19, 0 }
   0xa   : > { %p117_p3 = scmp.eq.s32.totalorder %s742_s20, 1  ;;  %p743_p5 = scmp.ge.s32.totalorder %s1048_s18, 1 }
   0xb   : > { %p1119_p4 = por %p1316_p1, %p45_p0  ;;  %p150_p7 = scmp.lt.s32.totalorder %s1048_s18, 3 }
   0xc   : > { %p1124_p6 = por %p117_p3, %p45_p0  ;;  %s1050_s24 = smov [#allocation6]  }
   0xd   : > { %s1320_s21 = scalar_select %p1119_p4, 1, 0 }
   0xe   : > { %s1321_s22 = scalar_select %p1124_p6, 1, 0 }
   0xf   : > { %p1129_p8 = pnand %p743_p5, %p150_p7  ;;  %s163_s25 = sshll.u32 %s1050_s24, 4  ;;  %s164_s25 = int_to_ptr.vmem [resolvable:$true] %s163_s25 }
  0x10   : > { %s1137_s26 = sadd.s32 1, %s1048_s18   ;;  %s32_s30 = sadd.s32 1, %s1044_s17 }
  0x11   : > { %s1322_s23 = scalar_select %p1129_p8, 1, 0 }
  0x12   : > { %p794_p10 = pneg %p1129_p8  ;;  %s29_s28 = ssub.s32 %s1048_s18, %s1137_s26 }
  0x13   : > { %p1147_p12 = scmp.eq.s32.totalorder %s29_s28, 0  ;;  %p39_p13 = scmp.ne.s32.totalorder %s1044_s17, %s1040_s16 }
  0x14   : > { %p1141_p11 = pnand %p794_p10, %p1316_p1  ;;  %s907_s5 = scalar_lea.vmem %s164_s25, 128 }
  0x15   : > { %p908_p3 = scmp.ne.s32.totalorder %s164_s25, %s907_s5  ;;  %p915_p9 = scmp.lt.s32.totalorder %s164_s25, %s164_s25 }
  0x16   : > { %p898_p0 = pneg %p1141_p11  ;;  %p916_p2 = scmp.lt.s32.totalorder %s907_s5, %s907_s5 }
  0x18   : > { %p910_p5 = pnand %p908_p3, %p898_p0  ;;  %p917_p10 = por %p916_p2, %p915_p9 }
  0x1a   : > { %p911_p7 = pneg %p910_p5 }
  0x1c   : > { %p918_p1 = pnand %p917_p10, %p911_p7 }
  0x1e   : > { %921 = shalt.err (!%p918_p1)
}
  0x1f   : > { %797 = dma.hbm_to_vmem [thread:$0]  (!%p1141_p11), %s1312_s1, 128, %s164_s25, [#allocation7]  }
  0x20   : > { %s1164_s8 = scalar_select %p1147_p12, %s1044_s17, %s32_s30  }
  0x21   : > { %p40_p1 = scmp.eq.s32.totalorder %s1048_s18, 0  ;;  %p1325_p2 = scmp.eq.s32.totalorder %s1110_s19, 1 }
  0x22   : > { %p810_p0 = scmp.lt.s32.totalorder %s1048_s18, 2  ;;  %s177_s10 = sand.u32 1, %s1044_s17  }
  0x23   : > { %p1172_p9 = por %p1325_p2, %p39_p13  ;;  %p41_p3 = por %p40_p1, %p39_p13 }
  0x24   : > { %s779_s11 = smul.u32 6, %s177_s10  ;;  %s178_s28 = scalar_lea.sflag [#allocation4], %s177_s10 }
  0x25   : > { %s1326_s9 = scalar_select %p1172_p9, 1, 0 }
  0x26   : > { %s780_s12 = smul.u32 96, %s1048_s18  ;;  %p1182_p5 = pnand %p810_p0, %p41_p3 }
  0x27   : > { %s181_s25 = scalar_lea.vmem [#allocation3], %s779_s11  ;;  %s927_s6 = scalar_lea.hbm %s1311_s0, 192 }
  0x28   : > { %s1189_s24 = scalar_lea.hbm %s1311_s0, %s780_s12  ;;  %s189_s27 = sshll.u32 %s181_s25, 4  ;;  %s190_s27 = int_to_ptr.vmem [resolvable:$true] %s189_s27 }
  0x29   : > { %s922_s29 = scalar_lea.hbm %s1189_s24, 96  ;;  %p924_p12 = pneg %p1182_p5 }
  0x2a   : > { %p923_p11 = scmp.ne.s32.totalorder %s1189_s24, %s922_s29  ;;  %p928_p10 = scmp.lt.s32.totalorder %s1189_s24, %s1311_s0 }
  0x2b   : > { %p929_p1 = scmp.lt.s32.totalorder %s927_s6, %s922_s29 }
  0x2c   : > { %p925_p13 = pnand %p924_p12, %p923_p11 }
  0x2d   : > { %p930_p2 = por %p929_p1, %p928_p10 }
  0x2e   : > { %p926_p7 = pneg %p925_p13 }
  0x30   : > { %p931_p0 = pnand %p930_p2, %p926_p7 }
  0x32   : > { %934 = shalt.err (!%p931_p0)
}
  0x33   : > { %s935_s11 = scalar_lea.vmem %s190_s27, 96  ;;  %s1051_s10 = smov [#allocation3]  }
  0x34   : > { %p936_p3 = scmp.ne.s32.totalorder %s190_s27, %s935_s11  ;;  %s940_s14 = sshll.u32 %s1051_s10, 4  ;;  %s941_s14 = int_to_ptr.vmem [resolvable:$false] %s940_s14 }
  0x35   : > { %s942_s20 = scalar_lea.vmem %s941_s14, 192  ;;  %p943_p11 = scmp.lt.s32.totalorder %s190_s27, %s941_s14 }
  0x36   : > { %p938_p6 = pnand %p936_p3, %p924_p12  ;;  %p944_p13 = scmp.lt.s32.totalorder %s942_s20, %s935_s11 }
  0x38   : > { %p939_p9 = pneg %p938_p6  ;;  %p945_p4 = por %p944_p13, %p943_p11 }
  0x3a   : > { %p946_p8 = pnand %p945_p4, %p939_p9 }
  0x3c   : > { %949 = shalt.err (!%p946_p8)
}
  0x3d   : > { %801 = dma.hbm_to_vmem [thread:$0]  (!%p1182_p5), %s1189_s24, 96, %s190_s27, %s178_s28  }
  0x3e   : > { %p1328_p7 = scmp.ne.s32.totalorder %s1322_s23, 0 }
  0x3f   : > { %s1208_s25 = sand.u32 (!%p1328_p7), 1, %s1040_s16   ;;  %p1329_p6 = scmp.ne.s32.totalorder (!%p1328_p7), %s1320_s21, 0 }
  0x40   : > { %198 = sbr.rel (%p1328_p7) target bundleno = 589 (0x24d), region = 32  ;;  %s201_s30 = scalar_lea.sflag (!%p1328_p7), [#allocation4], %s1208_s25 }
  0x41   : > { %s781_s29 = smul.u32 (!%p1328_p7), 6, %s1208_s25 }
  0x43   : > { %s204_s5 = scalar_lea.vmem (!%p1328_p7), [#allocation3], %s781_s29 }
  0x45   : > { %1019 = dma.done.wait (%p1329_p6), %s201_s30, 96  }
  0x46   : > { %1021 = vsyncadd (%p1329_p6), %s201_s30, 4294967200  ;;  %p1330_p4 = scmp.eq.s32.totalorder %s1110_s19, 0 }
  0x48   : > { %1023 = dma.done.wait (%p1330_p4), [#allocation7], 128   ;;  %p1331_p8 = pmov %p1330_p4 }
  0x49   : > { %v238_v0 = vld [vmem:[%s204_s5] sm:$0x3f]  ;;  %vm247_vm0 = vcmask 257024   ;;  %s1052_s23 = smov 90   ;;  %s1053_s21 = smov 92   ;;  %v1054_v7 = vmov 0.0  }
  0x4a   : > { %1025 = vsyncadd (%p1331_p8), [#allocation7], 4294967168  ;;  %v239_v1 = vunpack.c.l.bf16 %v238_v0  ;;  %v240_v2 = vunpack.c.h.bf16 %v238_v0  ;;  %766 = vmatprep.subr.mxu1 %v1054_v7  ;;  %466 = vmatprep.mubr.f32.mxu0 %v1054_v7  ;;  %s1055_s13 = smov 91   ;;  %s1056_s24 = smov 109   ;;  %vm1061_vm1 = vmmov 0   ;;  %vm333_vm2 = vcmask 752640  }
  0x4b   : > { %s1057_s27 = smov 108   ;;  %s1058_s28 = smov 126   ;;  %776 = vmatprep.mubr.msk.f32.mxu1 %vm1061_vm1, %v1054_v7  ;;  %vm265_vm3 = vcmask 261124   ;;  %vm363_vm4 = vcmask 736256   ;;  %vm348_vm5 = vcmask 744448   ;;  %vm303_vm6 = vcmask 891904  }
  0x4c   : > { %357 = vrot.lane.b32.xlu0 %v239_v1, %s1052_s23  ;;  %245 = vst [vmem:[#allocation2] sm:$0xf] %v239_v1  ;;  %v243_v3 = vcombine.high %v239_v1, %v239_v1  ;;  %v250_v4 = vcombine.low %v240_v2, %v240_v2  ;;  %248 = vst.msk [vmem:[#allocation2 + $0x10] sm:$0xf] %vm247_vm0, %v240_v2  ;;  %v249_v8 = vcombine.low %v239_v1, %v239_v1  ;;  %s1059_s6 = smov 110   ;;  %s1060_s7 = smov 127  }
  0x4d   : > { %vm392_vm7 = vcmask 1043456   ;;  %vm318_vm8 = vcmask 883712   ;;  %vm273_vm9 = vcmask 1031168   ;;  %vm288_vm10 = vcmask 900096   ;;  %s782_s12 = smul.u32 24, %s1208_s25  ;;  %p1332_p5 = scmp.ne.s32.totalorder %s1326_s9, 0 }
  0x4e   : > { %v861_v5 = vpack.i.bf16 %v240_v2, %v243_v3  ;;  %246 = vst [vmem:[#allocation2 + $0x8] sm:$0xf] %v243_v3  ;;  %v866_v6 = vpack.i.bf16 %v250_v4, %v239_v1  ;;  %vm257_vm11 = vcmask 1039360   ;;  %vm388_vm12 = vcmask 293888   ;;  %s783_s29 = smul.u32 384, %s1110_s19 }
  0x4f   : > { %vm545_vm13 = vcmask 261120   ;;  %s230_s14 = scalar_lea.vmem [#allocation8], %s782_s12 }
  0x50   : > { %327 = vrot.lane.b32.xlu0 %v239_v1, %s1053_s21  ;;  %862 = vrot.lane.b32.xlu1 %v861_v5, %s1053_s21  ;;  %s617_s20 = sshll.u32 %s230_s14, 4  ;;  %s598_s21 = scalar_lea.sflag [#allocation5], %s1208_s25  ;;  %s618_s20 = int_to_ptr.vmem [resolvable:$true] %s617_s20 }
  0x54   : > { %867 = vrot.lane.b32.xlu1 %v866_v6, %s1055_s13  ;;  %857 = vrot.lane.b32.xlu0 %v861_v5, %s1052_s23  ;;  %s615_s23 = scalar_lea.hbm %s1314_s3, %s783_s29 }
  0x58   : > { %342 = vrot.lane.b32.xlu1 %v249_v8, %s1055_s13  ;;  %872 = vrot.lane.b32.xlu0 %v861_v5, %s1056_s24  ;;  %s950_s13 = scalar_lea.vmem %s618_s20, 384 }
  0x59   : > { %p951_p9 = scmp.ne.s32.totalorder %s618_s20, %s950_s13 }
  0x5b   : > { %p952_p12 = pnand %p951_p9, %p1332_p5 }
  0x5c   : > { %877 = vrot.lane.b32.xlu1 %v866_v6, %s1057_s27  ;;  %297 = vrot.lane.b32.xlu0 %v239_v1, %s1056_s24  ;;  %s1062_s24 = smov [#allocation8]  }
  0x5d   : > { %p953_p10 = pneg %p952_p12 }
  0x60   : > { %312 = vrot.lane.b32.xlu1 %v249_v8, %s1057_s27  ;;  %882 = vrot.lane.b32.xlu0 %v861_v5, %s1058_s28  ;;  %v372_v5 = vld [vmem:[#allocation6] sm:$0xff]  ;;  %s954_s27 = sshll.u32 %s1062_s24, 4  ;;  %s955_s27 = int_to_ptr.vmem [resolvable:$false] %s954_s27 }
  0x61   : > { %p957_p1 = scmp.lt.s32.totalorder %s618_s20, %s955_s27 }
  0x64   : > { %887 = vrot.lane.b32.xlu1 %v866_v6, %s1059_s6  ;;  %267 = vrot.lane.b32.xlu0 %v239_v1, %s1058_s28  ;;  %s956_s28 = scalar_lea.vmem %s955_s27, 768 }
  0x65   : > { %p958_p2 = scmp.lt.s32.totalorder %s956_s28, %s950_s13 }
  0x67   : > { %p959_p0 = por %p958_p2, %p957_p1 }
  0x68   : > { %282 = vrot.lane.b32.xlu1 %v249_v8, %s1059_s6  ;;  %892 = vrot.lane.b32.xlu0 %v866_v6, %s1060_s7 }
  0x69   : > { %p960_p3 = pnand %p959_p0, %p953_p10 }
  0x6c   : > { %251 = vrot.lane.b32.xlu1 %v249_v8, %s1060_s7 }
  0xbe   : > { %v358_v9 = vpop.permute.xlu0 %357 }
  0xc2   : > { %v328_v10 = vpop.permute.xlu0 %327  ;;  %v863_v11 = vpop.permute.xlu1 %862 }
  0xc3   : > { %v865_v12 = vunpack.i.h.bf16 %v863_v11  ;;  %v864_v13 = vunpack.i.l.bf16 %v863_v11 }
  0xc5   : > { %341 = vst.msk [vmem:[#allocation2 + $0x58] sm:$0xf] %vm247_vm0, %v865_v12  ;;  %v334_v14 = vsel %vm333_vm2, %v328_v10, %v864_v13  ;;  %v335_v15 = vsel %vm333_vm2, %v864_v13, %v865_v12  ;;  %v549_v10 = vlaneseq }
  0xc6   : > { %339 = vst [vmem:[#allocation2 + $0x48] sm:$0xf] %v334_v14  ;;  %340 = vst [vmem:[#allocation2 + $0x50] sm:$0xf] %v335_v15  ;;  %v868_v16 = vpop.permute.xlu1 %867  ;;  %v858_v17 = vpop.permute.xlu0 %857 }
  0xc7   : > { %v870_v18 = vunpack.i.h.bf16 %v868_v16  ;;  %v869_v19 = vunpack.i.l.bf16 %v868_v16  ;;  %v860_v20 = vunpack.i.h.bf16 %v858_v17  ;;  %v859_v21 = vunpack.i.l.bf16 %v858_v17 }
  0xc8   : > { %v550_v11 = vshrl.u32 %v549_v10, 7  ;;  %v574_v12 = vand.u32 127, %v549_v10 }
  0xc9   : > { %356 = vst.msk [vmem:[#allocation2 + $0x58] sm:$0xf0] %vm265_vm3, %v870_v18  ;;  %v364_v22 = vsel %vm363_vm4, %v358_v9, %v859_v21  ;;  %v365_v23 = vsel %vm363_vm4, %v859_v21, %v860_v20  ;;  %v350_v24 = vsel %vm348_vm5, %v869_v19, %v870_v18 }
  0xca   : > { %371 = vst.msk [vmem:[#allocation2 + $0x70] sm:$0xf] %vm247_vm0, %v860_v20  ;;  %369 = vst [vmem:[#allocation2 + $0x60] sm:$0xf] %v364_v22  ;;  %v343_v25 = vpop.permute.xlu1 %342  ;;  %v873_v26 = vpop.permute.xlu0 %872  ;;  %v1247_v13 = vsub.s32 %v574_v12, %v550_v11  ;;  %v559_v14 = vsub.s32 2, %v550_v11  ;;  %v551_v15 = vsub.s32 0, %v550_v11 }
  0xcb   : > { %370 = vst [vmem:[#allocation2 + $0x68] sm:$0xf] %v365_v23  ;;  %355 = vst [vmem:[#allocation2 + $0x50] sm:$0xf0] %v350_v24  ;;  %v349_v27 = vsel %vm348_vm5, %v343_v25, %v869_v19  ;;  %v875_v28 = vunpack.i.h.bf16 %v873_v26  ;;  %v874_v29 = vunpack.i.l.bf16 %v873_v26  ;;  %v555_v16 = vsub.s32 1, %v550_v11 }
  0xcc   : > { %354 = vst [vmem:[#allocation2 + $0x48] sm:$0xf0] %v349_v27 }
  0xcd   : > { %311 = vst.msk [vmem:[#allocation2 + $0x40] sm:$0xf] %vm247_vm0, %v875_v28  ;;  %v305_v30 = vsel %vm303_vm6, %v874_v29, %v875_v28 }
  0xce   : > { %v878_v31 = vpop.permute.xlu1 %877  ;;  %v298_v32 = vpop.permute.xlu0 %297  ;;  %310 = vst [vmem:[#allocation2 + $0x38] sm:$0xf] %v305_v30 }
  0xcf   : > { %v880_v33 = vunpack.i.h.bf16 %v878_v31  ;;  %v879_v34 = vunpack.i.l.bf16 %v878_v31  ;;  %v304_v35 = vsel %vm303_vm6, %v298_v32, %v874_v29 }
  0xd0   : > { %309 = vst [vmem:[#allocation2 + $0x30] sm:$0xf] %v304_v35  ;;  %v384_v42 = vld [vmem:[#allocation2 + $0x58] sm:$0xff] }
  0xd1   : > { %v387_v36 = vld [vmem:[#allocation2 + $0x70] sm:$0xf]  ;;  %326 = vst.msk [vmem:[#allocation2 + $0x40] sm:$0xf0] %vm265_vm3, %v880_v33  ;;  %v320_v37 = vsel %vm318_vm8, %v879_v34, %v880_v33  ;;  %v385_v39 = vld [vmem:[#allocation2 + $0x60] sm:$0xf] }
  0xd2   : > { %767 = vmatpush3.msk.msra.mxu1 %vm392_vm7, %v387_v36  ;;  %v386_v38 = vld [vmem:[#allocation2 + $0x68] sm:$0xf]  ;;  %v313_v40 = vpop.permute.xlu1 %312  ;;  %325 = vst [vmem:[#allocation2 + $0x38] sm:$0xf0] %v320_v37  ;;  %v883_v41 = vpop.permute.xlu0 %882  ;;  %v383_v46 = vld [vmem:[#allocation2 + $0x50] sm:$0xff] }
  0xd3   : > { %750 = vmatprep.subr.msk.mxu0 %vm392_vm7, %v386_v38  ;;  %768 = vmatprep.subr.mxu1 %v1054_v7  ;;  %v319_v43 = vsel %vm318_vm8, %v313_v40, %v879_v34  ;;  %v885_v44 = vunpack.i.h.bf16 %v883_v41  ;;  %v884_v45 = vunpack.i.l.bf16 %v883_v41  ;;  %v382_v47 = vld [vmem:[#allocation2 + $0x48] sm:$0xff] }
  0xd4   : > { %751 = vmatpush1.msk.msra.mxu0 %vm392_vm7, %v385_v39  ;;  %769 = vmatpush3.msra.mxu1 %v384_v42  ;;  %324 = vst [vmem:[#allocation2 + $0x30] sm:$0xf0] %v319_v43 }
  0xd5   : > { %426 = vmatprep.subr.mxu0 %v383_v46  ;;  %770 = vmatprep.subr.mxu1 %v1054_v7  ;;  %281 = vst.msk [vmem:[#allocation2 + $0x28] sm:$0xf] %vm247_vm0, %v885_v44  ;;  %v275_v48 = vsel %vm273_vm9, %v884_v45, %v885_v44 }
  0xd6   : > { %427 = vmatpush1.msra.mxu0 %v382_v47  ;;  %v888_v49 = vpop.permute.xlu1 %887  ;;  %v268_v50 = vpop.permute.xlu0 %267  ;;  %280 = vst [vmem:[#allocation2 + $0x20] sm:$0xf] %v275_v48 }
  0xd7   : > { %v890_v51 = vunpack.i.h.bf16 %v888_v49  ;;  %v889_v52 = vunpack.i.l.bf16 %v888_v49  ;;  %v274_v53 = vsel %vm273_vm9, %v268_v50, %v884_v45 }
  0xd8   : > { %279 = vst [vmem:[#allocation2 + $0x18] sm:$0xf] %v274_v53  ;;  %v381_v54 = vld [vmem:[#allocation2 + $0x40] sm:$0xff] }
  0xd9   : > { %296 = vst.msk [vmem:[#allocation2 + $0x28] sm:$0xf0] %vm265_vm3, %v890_v51  ;;  %771 = vmatpush3.msra.mxu1 %v381_v54  ;;  %v290_v55 = vsel %vm288_vm10, %v889_v52, %v890_v51  ;;  %v380_v56 = vld [vmem:[#allocation2 + $0x38] sm:$0xff] }
  0xda   : > { %v283_v57 = vpop.permute.xlu1 %282  ;;  %295 = vst [vmem:[#allocation2 + $0x20] sm:$0xf0] %v290_v55  ;;  %428 = vmatprep.subr.mxu0 %v380_v56  ;;  %v893_v58 = vpop.permute.xlu0 %892  ;;  %772 = vmatprep.subr.mxu1 %v1054_v7 }
  0xdb   : > { %v289_v59 = vsel %vm288_vm10, %v283_v57, %v889_v52  ;;  %v895_v60 = vunpack.i.h.bf16 %v893_v58  ;;  %v894_v61 = vunpack.i.l.bf16 %v893_v58  ;;  %v379_v62 = vld [vmem:[#allocation2 + $0x30] sm:$0xff] }
  0xdc   : > { %294 = vst [vmem:[#allocation2 + $0x18] sm:$0xf0] %v289_v59  ;;  %429 = vmatpush1.msra.mxu0 %v379_v62 }
  0xdd   : > { %266 = vst.msk [vmem:[#allocation2 + $0x10] sm:$0xf0] %vm265_vm3, %v895_v60  ;;  %v259_v63 = vsel %vm257_vm11, %v894_v61, %v895_v60 }
  0xde   : > { %v252_v0 = vpop.permute.xlu1 %251  ;;  %264 = vst [vmem:[#allocation2 + $0x8] sm:$0xf0] %v259_v63 }
  0xdf   : > { %v258_v1 = vsel %vm257_vm11, %v252_v0, %v894_v61 }
  0xe0   : > { %263 = vst [vmem:[#allocation2] sm:$0xf0] %v258_v1  ;;  %v378_v2 = vld [vmem:[#allocation2 + $0x28] sm:$0xff] }
  0xe1   : > { %773 = vmatpush3.msra.mxu1 %v378_v2  ;;  %v377_v3 = vld [vmem:[#allocation2 + $0x20] sm:$0xff] }
  0xe2   : > { %430 = vmatprep.subr.mxu0 %v377_v3  ;;  %774 = vmatprep.subr.mxu1 %v1054_v7  ;;  %v547_v7 = vld [vmem:[%s1313_s2] sm:$0x7] }
  0xe3   : > { %v376_v4 = vld [vmem:[#allocation2 + $0x18] sm:$0xff]  ;;  %v560_v17 = vrot.slane %v547_v7, %v559_v14  ;;  %v552_v18 = vrot.slane %v547_v7, %v551_v15  ;;  %v556_v20 = vrot.slane %v547_v7, %v555_v16 }
  0xe4   : > { %431 = vmatpush1.msra.mxu0 %v376_v4  ;;  %v375_v6 = vld [vmem:[#allocation2 + $0x10] sm:$0xff] }
  0xe5   : > { %775 = vmatpush3.msra.mxu1 %v375_v6  ;;  %v374_v8 = vld [vmem:[#allocation2 + $0x8] sm:$0xff] }
  0xe6   : > { %432 = vmatprep.subr.mxu0 %v374_v8  ;;  %777 = vmatmul.mubr.msk.f32.vlgmr.msra.gmra.mxu1 %vm388_vm12, %v372_v5 }
  0xe7   : > { %v373_v9 = vld [vmem:[#allocation2] sm:$0xff] }
  0xe8   : > { %433 = vmatpush1.msra.mxu0 %v373_v9 }
  0xe9   : > { %752 = vmatmul.mubr.msk.f32.vlgmr.msra.gmra.mxu0 %vm388_vm12, %v372_v5 }
 0x1a6   : > { %v539_v19 = vpop.f32.mrf.mxu1 }
 0x1a7   : > { %546 = vst.msk [vmem:[%s230_s14 + $0x10] sm:$0xff] %vm545_vm13, %v539_v19  ;;  %v566_v23 = vmul.f32 %v560_v17, %v539_v19 }
 0x1a8   : > { %v778_v21 = vpop.f32.mrf.mxu1 }
 0x1a9   : > { %v468_v22 = vpop.f32.mrf.mxu0  ;;  %v584_v27 = vmul.f32 %v566_v23, %v539_v19  ;;  %v568_v28 = vsel %vm545_vm13, %v566_v23, 0.0 }
 0x1aa   : > { %543 = vst [vmem:[%s230_s14] sm:$0xff] %v468_v22  ;;  %v564_v24 = vmul.f32 %v552_v18, %v468_v22 }
 0x1ab   : > { %v470_v25 = vpop.f32.mrf.mxu0  ;;  %v586_v34 = vsel %vm545_vm13, %v584_v27, 0.0 }
 0x1ac   : > { %544 = vst [vmem:[%s230_s14 + $0x8] sm:$0xff] %v470_v25  ;;  %v565_v26 = vmul.f32 %v556_v20, %v470_v25  ;;  %v582_v29 = vmul.f32 %v564_v24, %v468_v22 }
 0x1ae   : > { %v583_v30 = vmul.f32 %v565_v26, %v470_v25  ;;  %v567_v31 = vadd.f32 %v565_v26, %v564_v24 }
 0x1b0   : > { %v569_v32 = vadd.f32 %v568_v28, %v567_v31  ;;  %v585_v33 = vadd.f32 %v583_v30, %v582_v29 }
 0x1b2   : > { %570 = vadd.xlane.f32.xlu0 %v569_v32  ;;  %v587_v35 = vadd.f32 %v586_v34, %v585_v33 }
 0x1b4   : > { %588 = vadd.xlane.f32.xlu1 %v587_v35 }
 0x1b5   : > { %963 = shalt.err (!%p960_p3)
}
 0x1b6   : > { %s964_s6 = scalar_lea.hbm %s615_s23, 384  ;;  %s968_s11 = scalar_lea.hbm %s1314_s3, 768 }
 0x1b7   : > { %p965_p11 = scmp.ne.s32.totalorder %s615_s23, %s964_s6  ;;  %p969_p6 = scmp.lt.s32.totalorder %s615_s23, %s1314_s3 }
 0x1b8   : > { %p970_p4 = scmp.lt.s32.totalorder %s968_s11, %s964_s6 }
 0x1b9   : > { %p966_p13 = pnand %p965_p11, %p1332_p5 }
 0x1ba   : > { %p971_p8 = por %p970_p4, %p969_p6 }
 0x1bb   : > { %p967_p7 = pneg %p966_p13 }
 0x1bd   : > { %p972_p9 = pnand %p971_p8, %p967_p7 }
 0x1bf   : > { %975 = shalt.err (!%p972_p9)
}
 0x1c0   : > { %790 = dma.vmem_to_hbm [thread:$0]  (%p1332_p5), %s618_s20, 384, %s615_s23, %s598_s21   ;;  %vm580_vm14 = vcmask 57344  }
 0x1c1   : > { %s749_s29 = sshll.u32 %s1208_s25, 1  ;;  %s757_s30 = sshll.u32 %s1110_s19, 5 }
 0x1c2   : > { %s237_s5 = scalar_lea.vmem [#allocation9], %s749_s29  ;;  %s628_s28 = scalar_lea.hbm %s1315_s4, %s757_s30 }
 0x1c3   : > { %s630_s13 = sshll.u32 %s237_s5, 4  ;;  %s603_s20 = scalar_lea.sflag [#allocation10], %s1208_s25  ;;  %s631_s13 = int_to_ptr.vmem [resolvable:$true] %s630_s13 }
 0x1c4   : > { %s976_s23 = scalar_lea.vmem %s631_s13, 32  ;;  %s1063_s19 = smov [#allocation9]  }
 0x1c5   : > { %p977_p12 = scmp.ne.s32.totalorder %s631_s13, %s976_s23  ;;  %s980_s21 = sshll.u32 %s1063_s19, 4  ;;  %s981_s21 = int_to_ptr.vmem [resolvable:$false] %s980_s21 }
 0x1c6   : > { %s982_s6 = scalar_lea.vmem %s981_s21, 64  ;;  %p983_p2 = scmp.lt.s32.totalorder %s631_s13, %s981_s21 }
 0x1c7   : > { %p978_p10 = pnand %p977_p12, %p1332_p5  ;;  %p984_p0 = scmp.lt.s32.totalorder %s982_s6, %s976_s23 }
 0x1c9   : > { %p979_p1 = pneg %p978_p10  ;;  %p985_p3 = por %p984_p0, %p983_p2 }
 0x1cb   : > { %p986_p11 = pnand %p985_p3, %p979_p1 }
 0x23b   : > { %v571_v36 = vpop.xlane.xlu0 %570 }
 0x23c   : > { %v578_v37 = vrot.slane %v571_v36, %v1247_v13 }
 0x23d   : > { %v589_v38 = vpop.xlane.xlu1 %588 }
 0x23e   : > { %v594_v39 = vrot.slane %v589_v38, %v1247_v13  ;;  %581 = vst.msk [vmem:[%s237_s5] sm:$0x1] %vm580_vm14, %v578_v37 }
 0x240   : > { %596 = vst.msk [vmem:[%s237_s5 + $0x1] sm:$0x1] %vm580_vm14, %v594_v39 }
 0x241   : > { %989 = shalt.err (!%p986_p11)
}
 0x242   : > { %s990_s7 = scalar_lea.hbm %s628_s28, 32  ;;  %s994_s11 = scalar_lea.hbm %s1315_s4, 64 }
 0x243   : > { %p991_p13 = scmp.ne.s32.totalorder %s628_s28, %s990_s7  ;;  %p995_p4 = scmp.lt.s32.totalorder %s628_s28, %s1315_s4 }
 0x244   : > { %p996_p8 = scmp.lt.s32.totalorder %s994_s11, %s990_s7 }
 0x245   : > { %p992_p7 = pnand %p991_p13, %p1332_p5 }
 0x246   : > { %p997_p9 = por %p996_p8, %p995_p4 }
 0x247   : > { %p993_p6 = pneg %p992_p7 }
 0x249   : > { %p998_p12 = pnand %p997_p9, %p993_p6 }
 0x24b   : > { %1001 = shalt.err (!%p998_p12)
}
 0x24c   : > { %791 = dma.vmem_to_hbm [thread:$0]  (%p1332_p5), %s631_s13, 32, %s628_s28, %s603_s20  }
 0x24d PF: > { %s642_s29 = sand.u32 1, %s1036_s15   ;;  %p1333_p10 = scmp.ne.s32.totalorder %s1321_s22, 0 }
 0x24e   : > { %p1334_p1 = scmp.ge.s32.totalorder %s1048_s18, 2  ;;  %s643_s30 = scalar_lea.sflag [#allocation5], %s642_s29 }
 0x250   : > { %p803_p2 = pnand %p1334_p1, %p1333_p10 }
 0x252   : > { %p804_p0 = pneg %p803_p2 }
 0x254   : > { %1027 = dma.done.wait (%p804_p0), %s643_s30, 384  }
 0x255   : > { %1029 = vsyncadd (%p804_p0), %s643_s30, 4294966912  ;;  %s652_s5 = scalar_lea.sflag [#allocation10], %s642_s29 }
 0x256   : > { %1031 = dma.done.wait (%p804_p0), %s652_s5, 32  }
 0x257   : > { %1033 = vsyncadd (%p804_p0), %s652_s5, 4294967264  ;;  %p22_p5 = scmp.ge.s32.totalorder %s1137_s26, 4   ;;  %s1335_s15 = smov %s1040_s16 }
 0x258   : > { %s1336_s16 = smov %s1044_s17  ;;  %s1337_s17 = smov %s1164_s8 }
 0x259   : > { %s1338_s18 = smov %s1137_s26  ;;  %24 = sbr.rel (!%p22_p5) target bundleno = 8 (0x8), region = 98 }
 0x25e   :  { %657 = vsyncpa [#allocation4], 1 }
 0x25f   :  { %659 = vsyncpa [#allocation4 + $0x1], 1 }
 0x260   :  { %660 = vsyncpa [#allocation7], 1 }
 0x261   :  { %661 = vsyncpa [#allocation5], 1 }
 0x262   :  { %663 = vsyncpa [#allocation5 + $0x1], 1 }
 0x263   :  { %664 = vsyncpa [#allocation10], 1 }
 0x264   :  { %666 = vsyncpa [#allocation10 + $0x1], 1 }

</bundles_post_ra>
